<compile_context>
chip_gen: v7x
topology: tpu7x:2x2x1
jax: 0.10.0
libtpu: 0.0.40
codegen_flags: <defaults>
</compile_context>

<pallas_src>
import functools

import jax
import jax.numpy as jnp
from jax.experimental import pallas as pl
from jax.experimental.pallas import tpu as pltpu

LN_EPS = 1e-5  # PyTorch nn.LayerNorm default eps


def _round_up(x, m):
    return (x + m - 1) // m * m


# ----------------------------- kernel ---------------------------------------


def _ln_noaffine_masked(x, n_real):
    """LayerNorm(elementwise_affine=False) over the last dim.

    `x` may be zero-padded along the last dim; padded pre-LN entries are exactly
    zero, so sum/sum-of-squares over the padded width divided by the *real*
    feature count reproduce the un-padded mean/biased-variance exactly.
    """
    inv_n = 1.0 / float(n_real)
    s = jnp.sum(x, axis=-1, keepdims=True)
    ss = jnp.sum(x * x, axis=-1, keepdims=True)
    mu = s * inv_n
    var = jnp.maximum(ss * inv_n - mu * mu, 0.0)  # guard f32 cancellation
    return (x - mu) * jax.lax.rsqrt(var + LN_EPS)


def _decoder_splice_kernel(z_ref, cat_ref, w0_ref, w0cat_ref, b0_ref, w1_ref,
                           b1_ref, out_ref, *, n_hidden, n_output, n_cat):
    # Layer 0: Linear (bf16 MXU operands, f32 accumulation).  z is streamed f32
    # and cast here (VPU cast is free under the memory roofline).
    h = jnp.dot(z_ref[...].astype(jnp.bfloat16), w0_ref[...],
                preferred_element_type=jnp.float32)
    h = h + b0_ref[...]

    # Covariate injection (first layer only; no deep injection): fold the
    # one-hot matmul into a row-select over the tiny resident table
    #   onehot(c) @ W0_cat == W0_cat[c]
    cat = cat_ref[...]                       # (tb, 1) int32
    for c in range(n_cat):                   # static unroll over few categories
        row = w0cat_ref[pl.ds(c, 1), :]      # (1, n_hidden_p) f32
        h = h + jnp.where(cat == c, row, 0.0)

    # LayerNorm(no affine) -> ReLU.  (Dropout = identity in eval.)
    h = jnp.maximum(_ln_noaffine_masked(h, n_hidden), 0.0)

    # Layer 1: Linear -> LayerNorm(no affine) -> ReLU.
    o = jnp.dot(h.astype(w1_ref.dtype), w1_ref[...],
                preferred_element_type=jnp.float32)
    o = o + b1_ref[...]
    o = jnp.maximum(_ln_noaffine_masked(o, n_output), 0.0)

    # DecoderSplice: sigmoid; store bf16 (lane-dense padded slab).
    out_ref[...] = jax.nn.sigmoid(o).astype(out_ref.dtype)


# ----------------------------- wrapper ---------------------------------------


def _tpu_vmem_capacity_bytes():
    try:
        return int(pltpu.get_tpu_info().vmem_capacity_bytes)
    except Exception:
        return 64 << 20  # conservative default (v7x per-core VMEM)


def decoder_splice_forward(z, cat_idx, params, n_cat):
    """z: [B, n_input] f32, cat_idx: [B] int categorical covariate.

    Returns sigmoid probabilities [B, n_output] in bfloat16.
    """
    w0, b0, w1, b1 = params  # [in, out] layout (pre-transposed), f32
    B, n_input = z.shape
    n_hidden = w0.shape[1]
    n_output = w1.shape[1]
    assert w0.shape[0] == n_input + n_cat

    n_hidden_p = _round_up(n_hidden, 128)
    n_output_p = _round_up(n_output, 128)

    # Resident operands: weights in bf16 for the MXU; the covariate bias table
    # and the bias vectors stay f32 (exact add before LayerNorm).
    w0_z = jnp.pad(w0[:n_input],
                   ((0, 0), (0, n_hidden_p - n_hidden))).astype(jnp.bfloat16)
    w0_cat = jnp.pad(w0[n_input:], ((0, 0), (0, n_hidden_p - n_hidden)))
    b0_p = jnp.pad(b0, ((0, 0), (0, n_hidden_p - n_hidden)))
    w1_p = jnp.pad(w1, ((0, n_hidden_p - n_hidden),
                        (0, n_output_p - n_output))).astype(jnp.bfloat16)
    b1_p = jnp.pad(b1, ((0, 0), (0, n_output_p - n_output)))

    # ---- batch-tile sizing with generation-aware VMEM accounting ------------
    vmem_cap = _tpu_vmem_capacity_bytes()
    # 128 MiB parts (v5e/v6e) can spend half of VMEM; 64 MiB (v7x) stays lean.
    budget = vmem_cap // 2 if vmem_cap >= (100 << 20) else vmem_cap // 3
    # Resident weights/tables (x2: the pipeline may still double-buffer them).
    resident = 2 * (2 * n_input * n_hidden_p        # W0 (bf16)
                    + 2 * n_hidden_p * n_output_p   # W1 (bf16)
                    + 4 * n_cat * n_hidden_p        # covariate table (f32)
                    + 4 * n_hidden_p                # b0
                    + 4 * n_output_p)               # b1
    # Per-row bytes: double-buffered streams + live in-kernel intermediates
    # (pre/post-LN h, bf16 h copy, o, LN temporaries).
    per_row = (2 * (4 * n_input + 4 + 2 * n_output_p)
               + 5 * 4 * max(n_hidden_p, n_output_p))
    tb = (budget - resident) // max(per_row, 1)
    tb = max(16, min(4096, tb))
    tb = (tb // 16) * 16
    # Keep the grid multi-step once B is big enough: pipelining + v7x megacore.
    tb = min(tb, _round_up(pl.cdiv(B, 8), 16))
    tb = max(tb, 16)

    b_pad = _round_up(B, tb)
    cat2d = cat_idx.astype(jnp.int32).reshape(B, 1)
    if b_pad != B:
        z = jnp.pad(z, ((0, b_pad - B), (0, 0)))
        cat2d = jnp.pad(cat2d, ((0, b_pad - B), (0, 0)))
    grid = (b_pad // tb,)

    vmem_needed = resident + tb * per_row
    vmem_limit = int(min(int(0.72 * vmem_cap), max(32 << 20, 2 * vmem_needed)))

    kernel = functools.partial(_decoder_splice_kernel, n_hidden=n_hidden,
                               n_output=n_output, n_cat=n_cat)

    flops = 2 * b_pad * (n_input * n_hidden_p + n_hidden_p * n_output_p)
    transcendentals = b_pad * (n_output_p + 2)  # sigmoid + 2 rsqrt per row
    bytes_accessed = (4 * b_pad * n_input + 4 * b_pad        # z + cat streams
                      + 2 * w0_z.size + 4 * w0_cat.size + 4 * b0_p.size
                      + 2 * w1_p.size + 4 * b1_p.size
                      + 2 * b_pad * n_output_p)              # bf16 output

    out = pl.pallas_call(
        kernel,
        out_shape=jax.ShapeDtypeStruct((b_pad, n_output_p), jnp.bfloat16),
        grid=grid,
        in_specs=[
            pl.BlockSpec((tb, n_input), lambda i: (i, 0)),             # z tile (f32)
            pl.BlockSpec((tb, 1), lambda i: (i, 0)),                   # cat idx tile
            pl.BlockSpec((n_input, n_hidden_p), lambda i: (0, 0)),     # W0 (resident)
            pl.BlockSpec((n_cat, n_hidden_p), lambda i: (0, 0)),       # W0_cat table
            pl.BlockSpec((1, n_hidden_p), lambda i: (0, 0)),           # b0 (resident)
            pl.BlockSpec((n_hidden_p, n_output_p), lambda i: (0, 0)),  # W1 (resident)
            pl.BlockSpec((1, n_output_p), lambda i: (0, 0)),           # b1 (resident)
        ],
        out_specs=pl.BlockSpec((tb, n_output_p), lambda i: (i, 0)),
        compiler_params=pltpu.CompilerParams(
            dimension_semantics=("parallel",),
            vmem_limit_bytes=vmem_limit),
        cost_estimate=pl.CostEstimate(
            flops=flops,
            transcendentals=transcendentals,
            bytes_accessed=bytes_accessed),
    )(z, cat2d, w0_z, w0_cat, b0_p, w1_p, b1_p)

    # TODO(synk): downstream consumers could take the padded bf16 slab directly
    # and skip this slice (it is an extra HBM pass at very large B * n_output).
    return out[:B, :n_output]


# ----------------------------- reference & init ------------------------------


def _layernorm_noaffine_ref(x):
    mu = jnp.mean(x, axis=-1, keepdims=True)
    var = jnp.mean((x - mu) * (x - mu), axis=-1, keepdims=True)
    return (x - mu) * jax.lax.rsqrt(var + LN_EPS)


def reference_forward(z, cat_idx, params, n_cat):
    """Pure-JAX f32 reference mirroring FCLayers (eval mode) + sigmoid."""
    w0, b0, w1, b1 = params
    onehot = jax.nn.one_hot(cat_idx, n_cat, dtype=z.dtype)
    x = jnp.concatenate([z, onehot], axis=-1)
    h = jnp.maximum(_layernorm_noaffine_ref(x @ w0 + b0), 0.0)
    o = jnp.maximum(_layernorm_noaffine_ref(h @ w1 + b1), 0.0)
    return jax.nn.sigmoid(o)


def init_params(key, n_input, n_cat, n_hidden, n_output):
    """Deterministic param init. Weights stored as [in, out] (pre-transposed)."""
    k0, k1, k2, k3 = jax.random.split(key, 4)
    d0_in = n_input + n_cat
    w0 = jax.random.normal(k0, (d0_in, n_hidden), jnp.float32) * (1.0 / jnp.sqrt(d0_in))
    b0 = jax.random.normal(k1, (1, n_hidden), jnp.float32) * 0.01
    w1 = jax.random.normal(k2, (n_hidden, n_output), jnp.float32) * (1.0 / jnp.sqrt(n_hidden))
    b1 = jax.random.normal(k3, (1, n_output), jnp.float32) * 0.01
    return (w0, b0, w1, b1)


if __name__ == "__main__":
    # Small shapes consistent with the module (n_hidden default is 128).
    B, n_input, n_hidden, n_output = 64, 16, 128, 24
    n_cat = 3  # n_cat_list = [3]

    key = jax.random.PRNGKey(0)
    kz, kc, kp = jax.random.split(key, 3)
    z = jax.random.normal(kz, (B, n_input), jnp.float32)
    cat_idx = jax.random.randint(kc, (B,), 0, n_cat, jnp.int32)
    params = init_params(kp, n_input, n_cat, n_hidden, n_output)

    ps = decoder_splice_forward(z, cat_idx, params, n_cat)
    ps = jax.block_until_ready(ps)

    ref = reference_forward(z, cat_idx, params, n_cat)
    assert ps.shape == (B, n_output)
    ps_f32 = ps.astype(jnp.float32)
    assert bool(jnp.all(jnp.isfinite(ps_f32)))
    # bf16 MXU operands + bf16 output vs. full-f32 reference -> relaxed tolerance.
    assert float(jnp.max(jnp.abs(ps_f32 - ref))) < 3e-2
    print("KERNEL_OK")
</pallas_src>

<mosaic_0001>
module attributes {stable_mosaic.version = 11 : i64} {
  func.func @_decoder_splice_kernel(%arg0: i32, %arg1: memref<16x16xf32, #tpu.memory_space<vmem>>, %arg2: memref<16x1xi32, #tpu.memory_space<vmem>>, %arg3: memref<16x128xbf16, #tpu.memory_space<vmem>>, %arg4: memref<3x128xf32, #tpu.memory_space<vmem>>, %arg5: memref<1x128xf32, #tpu.memory_space<vmem>>, %arg6: memref<128x128xbf16, #tpu.memory_space<vmem>>, %arg7: memref<1x128xf32, #tpu.memory_space<vmem>>, %arg8: memref<16x128xbf16, #tpu.memory_space<vmem>>) attributes {dimension_semantics = [#tpu.dimension_semantics<parallel>], iteration_bounds = array<i64: 4>, scalar_prefetch = 0 : i64, scratch_operands = 0 : i64, tpu.core_type = #tpu.core_type<tc>, window_params = [{transform_indices = @transform_0, window_bounds = array<i64: 16, 16>}, {transform_indices = @transform_1, window_bounds = array<i64: 16, 1>}, {pipeline_mode = #tpu.pipeline_mode<synchronous>, transform_indices = @transform_2, window_bounds = array<i64: 16, 128>}, {pipeline_mode = #tpu.pipeline_mode<synchronous>, transform_indices = @transform_3, window_bounds = array<i64: 3, 128>}, {pipeline_mode = #tpu.pipeline_mode<synchronous>, transform_indices = @transform_4, window_bounds = array<i64: 1, 128>}, {pipeline_mode = #tpu.pipeline_mode<synchronous>, transform_indices = @transform_5, window_bounds = array<i64: 128, 128>}, {pipeline_mode = #tpu.pipeline_mode<synchronous>, transform_indices = @transform_6, window_bounds = array<i64: 1, 128>}, {transform_indices = @transform_7, window_bounds = array<i64: 16, 128>}]} {
    %c0 = arith.constant 0 : index
    %c0_0 = arith.constant 0 : index
    %0 = vector.load %arg1[%c0, %c0_0] : memref<16x16xf32, #tpu.memory_space<vmem>>, vector<16x16xf32>
    %1 = arith.truncf %0 : vector<16x16xf32> to vector<16x16xbf16>
    %c0_1 = arith.constant 0 : index
    %c0_2 = arith.constant 0 : index
    %2 = vector.load %arg3[%c0_1, %c0_2] : memref<16x128xbf16, #tpu.memory_space<vmem>>, vector<16x128xbf16>
    %cst = arith.constant dense<0.000000e+00> : vector<16x128xf32>
    %3 = tpu.matmul %1, %2, %cst {dimension_numbers = #tpu.dot_dimension_numbers<[1], [0], [0], [1], [0, 0, 1, 1], [], []>} : vector<16x16xbf16>, vector<16x128xbf16>, vector<16x128xf32> -> vector<16x128xf32>
    %c0_3 = arith.constant 0 : index
    %c0_4 = arith.constant 0 : index
    %4 = vector.load %arg5[%c0_3, %c0_4] : memref<1x128xf32, #tpu.memory_space<vmem>>, vector<1x128xf32>
    %5 = vector.broadcast %4 : vector<1x128xf32> to vector<16x128xf32>
    %6 = arith.addf %3, %5 : vector<16x128xf32>
    %c0_5 = arith.constant 0 : index
    %c0_6 = arith.constant 0 : index
    %7 = vector.load %arg2[%c0_5, %c0_6] : memref<16x1xi32, #tpu.memory_space<vmem>>, vector<16x1xi32>
    %c0_7 = arith.constant 0 : index
    %c0_8 = arith.constant 0 : index
    %8 = vector.load %arg4[%c0_7, %c0_8] : memref<3x128xf32, #tpu.memory_space<vmem>>, vector<1x128xf32>
    %c0_i32 = arith.constant 0 : i32
    %9 = vector.broadcast %c0_i32 : i32 to vector<16x1xi32>
    %10 = arith.cmpi eq, %7, %9 : vector<16x1xi32>
    %cst_9 = arith.constant 0.000000e+00 : f32
    %11 = vector.shape_cast %10 : vector<16x1xi1> to vector<16x1xi1>
    %12 = vector.broadcast %11 : vector<16x1xi1> to vector<16x128xi1>
    %13 = vector.shape_cast %8 : vector<1x128xf32> to vector<1x128xf32>
    %14 = vector.broadcast %13 : vector<1x128xf32> to vector<16x128xf32>
    %15 = vector.broadcast %cst_9 : f32 to vector<16x128xf32>
    %16 = arith.select %12, %14, %15 : vector<16x128xi1>, vector<16x128xf32>
    %17 = arith.addf %6, %16 : vector<16x128xf32>
    %c1 = arith.constant 1 : index
    %c0_10 = arith.constant 0 : index
    %18 = vector.load %arg4[%c1, %c0_10] : memref<3x128xf32, #tpu.memory_space<vmem>>, vector<1x128xf32>
    %c1_i32 = arith.constant 1 : i32
    %19 = vector.broadcast %c1_i32 : i32 to vector<16x1xi32>
    %20 = arith.cmpi eq, %7, %19 : vector<16x1xi32>
    %cst_11 = arith.constant 0.000000e+00 : f32
    %21 = vector.shape_cast %20 : vector<16x1xi1> to vector<16x1xi1>
    %22 = vector.broadcast %21 : vector<16x1xi1> to vector<16x128xi1>
    %23 = vector.shape_cast %18 : vector<1x128xf32> to vector<1x128xf32>
    %24 = vector.broadcast %23 : vector<1x128xf32> to vector<16x128xf32>
    %25 = vector.broadcast %cst_11 : f32 to vector<16x128xf32>
    %26 = arith.select %22, %24, %25 : vector<16x128xi1>, vector<16x128xf32>
    %27 = arith.addf %17, %26 : vector<16x128xf32>
    %c2 = arith.constant 2 : index
    %c0_12 = arith.constant 0 : index
    %28 = vector.load %arg4[%c2, %c0_12] : memref<3x128xf32, #tpu.memory_space<vmem>>, vector<1x128xf32>
    %c2_i32 = arith.constant 2 : i32
    %29 = vector.broadcast %c2_i32 : i32 to vector<16x1xi32>
    %30 = arith.cmpi eq, %7, %29 : vector<16x1xi32>
    %cst_13 = arith.constant 0.000000e+00 : f32
    %31 = vector.shape_cast %30 : vector<16x1xi1> to vector<16x1xi1>
    %32 = vector.broadcast %31 : vector<16x1xi1> to vector<16x128xi1>
    %33 = vector.shape_cast %28 : vector<1x128xf32> to vector<1x128xf32>
    %34 = vector.broadcast %33 : vector<1x128xf32> to vector<16x128xf32>
    %35 = vector.broadcast %cst_13 : f32 to vector<16x128xf32>
    %36 = arith.select %32, %34, %35 : vector<16x128xi1>, vector<16x128xf32>
    %37 = arith.addf %27, %36 : vector<16x128xf32>
    %cst_14 = arith.constant dense<0.000000e+00> : vector<16xf32>
    %38 = vector.multi_reduction <add>, %37, %cst_14 [1] : vector<16x128xf32> to vector<16xf32>
    %39 = vector.shape_cast %38 : vector<16xf32> to vector<16x1xf32>
    %40 = arith.mulf %37, %37 : vector<16x128xf32>
    %cst_15 = arith.constant dense<0.000000e+00> : vector<16xf32>
    %41 = vector.multi_reduction <add>, %40, %cst_15 [1] : vector<16x128xf32> to vector<16xf32>
    %42 = vector.shape_cast %41 : vector<16xf32> to vector<16x1xf32>
    %cst_16 = arith.constant 7.812500e-03 : f32
    %43 = vector.broadcast %cst_16 : f32 to vector<16x1xf32>
    %44 = arith.mulf %39, %43 : vector<16x1xf32>
    %cst_17 = arith.constant 7.812500e-03 : f32
    %45 = vector.broadcast %cst_17 : f32 to vector<16x1xf32>
    %46 = arith.mulf %42, %45 : vector<16x1xf32>
    %47 = arith.mulf %44, %44 : vector<16x1xf32>
    %48 = arith.subf %46, %47 : vector<16x1xf32>
    %cst_18 = arith.constant 0.000000e+00 : f32
    %49 = vector.broadcast %cst_18 : f32 to vector<16x1xf32>
    %50 = arith.maximumf %48, %49 : vector<16x1xf32>
    %51 = vector.broadcast %44 : vector<16x1xf32> to vector<16x128xf32>
    %52 = arith.subf %37, %51 : vector<16x128xf32>
    %cst_19 = arith.constant 9.99999974E-6 : f32
    %53 = vector.broadcast %cst_19 : f32 to vector<16x1xf32>
    %54 = arith.addf %50, %53 : vector<16x1xf32>
    %55 = math.rsqrt %54 : vector<16x1xf32>
    %56 = vector.broadcast %55 : vector<16x1xf32> to vector<16x128xf32>
    %57 = arith.mulf %52, %56 : vector<16x128xf32>
    %cst_20 = arith.constant 0.000000e+00 : f32
    %58 = vector.broadcast %cst_20 : f32 to vector<16x128xf32>
    %59 = arith.maximumf %57, %58 : vector<16x128xf32>
    %60 = arith.truncf %59 : vector<16x128xf32> to vector<16x128xbf16>
    %c0_21 = arith.constant 0 : index
    %c0_22 = arith.constant 0 : index
    %61 = vector.load %arg6[%c0_21, %c0_22] : memref<128x128xbf16, #tpu.memory_space<vmem>>, vector<128x128xbf16>
    %cst_23 = arith.constant dense<0.000000e+00> : vector<16x128xf32>
    %62 = tpu.matmul %60, %61, %cst_23 {dimension_numbers = #tpu.dot_dimension_numbers<[1], [0], [0], [1], [0, 0, 1, 1], [], []>} : vector<16x128xbf16>, vector<128x128xbf16>, vector<16x128xf32> -> vector<16x128xf32>
    %c0_24 = arith.constant 0 : index
    %c0_25 = arith.constant 0 : index
    %63 = vector.load %arg7[%c0_24, %c0_25] : memref<1x128xf32, #tpu.memory_space<vmem>>, vector<1x128xf32>
    %64 = vector.broadcast %63 : vector<1x128xf32> to vector<16x128xf32>
    %65 = arith.addf %62, %64 : vector<16x128xf32>
    %cst_26 = arith.constant dense<0.000000e+00> : vector<16xf32>
    %66 = vector.multi_reduction <add>, %65, %cst_26 [1] : vector<16x128xf32> to vector<16xf32>
    %67 = vector.shape_cast %66 : vector<16xf32> to vector<16x1xf32>
    %68 = arith.mulf %65, %65 : vector<16x128xf32>
    %cst_27 = arith.constant dense<0.000000e+00> : vector<16xf32>
    %69 = vector.multi_reduction <add>, %68, %cst_27 [1] : vector<16x128xf32> to vector<16xf32>
    %70 = vector.shape_cast %69 : vector<16xf32> to vector<16x1xf32>
    %cst_28 = arith.constant 0.0416666679 : f32
    %71 = vector.broadcast %cst_28 : f32 to vector<16x1xf32>
    %72 = arith.mulf %67, %71 : vector<16x1xf32>
    %cst_29 = arith.constant 0.0416666679 : f32
    %73 = vector.broadcast %cst_29 : f32 to vector<16x1xf32>
    %74 = arith.mulf %70, %73 : vector<16x1xf32>
    %75 = arith.mulf %72, %72 : vector<16x1xf32>
    %76 = arith.subf %74, %75 : vector<16x1xf32>
    %cst_30 = arith.constant 0.000000e+00 : f32
    %77 = vector.broadcast %cst_30 : f32 to vector<16x1xf32>
    %78 = arith.maximumf %76, %77 : vector<16x1xf32>
    %79 = vector.broadcast %72 : vector<16x1xf32> to vector<16x128xf32>
    %80 = arith.subf %65, %79 : vector<16x128xf32>
    %cst_31 = arith.constant 9.99999974E-6 : f32
    %81 = vector.broadcast %cst_31 : f32 to vector<16x1xf32>
    %82 = arith.addf %78, %81 : vector<16x1xf32>
    %83 = math.rsqrt %82 : vector<16x1xf32>
    %84 = vector.broadcast %83 : vector<16x1xf32> to vector<16x128xf32>
    %85 = arith.mulf %80, %84 : vector<16x128xf32>
    %cst_32 = arith.constant 0.000000e+00 : f32
    %86 = vector.broadcast %cst_32 : f32 to vector<16x128xf32>
    %87 = arith.maximumf %85, %86 : vector<16x128xf32>
    %88 = arith.negf %87 : vector<16x128xf32>
    %89 = math.exp %88 : vector<16x128xf32>
    %cst_33 = arith.constant 1.000000e+00 : f32
    %90 = vector.broadcast %cst_33 : f32 to vector<16x128xf32>
    %91 = arith.addf %90, %89 : vector<16x128xf32>
    %92 = arith.divf %90, %91 : vector<16x128xf32>
    %93 = arith.truncf %92 : vector<16x128xf32> to vector<16x128xbf16>
    %c0_34 = arith.constant 0 : index
    %c0_35 = arith.constant 0 : index
    %94 = vector.load %arg8[%c0_34, %c0_35] : memref<16x128xbf16, #tpu.memory_space<vmem>>, vector<16x128xbf16>
    tpu.vector_store %arg8[%c0_34, %c0_35], %93 {strides = array<i32>} : memref<16x128xbf16, #tpu.memory_space<vmem>>, vector<16x128xbf16>,
    return
  }
  func.func @transform_0(%arg0: i32) -> (i32, i32) {
    %c0_i32 = arith.constant 0 : i32
    %c0_i32_0 = arith.constant 0 : i32
    return %arg0, %c0_i32 : i32, i32
  }
  func.func @transform_1(%arg0: i32) -> (i32, i32) {
    %c0_i32 = arith.constant 0 : i32
    %c0_i32_0 = arith.constant 0 : i32
    return %arg0, %c0_i32 : i32, i32
  }
  func.func @transform_2(%arg0: i32) -> (i32, i32) {
    %c0_i32 = arith.constant 0 : i32
    %c0_i32_0 = arith.constant 0 : i32
    %c0_i32_1 = arith.constant 0 : i32
    return %c0_i32, %c0_i32_0 : i32, i32
  }
  func.func @transform_3(%arg0: i32) -> (i32, i32) {
    %c0_i32 = arith.constant 0 : i32
    %c0_i32_0 = arith.constant 0 : i32
    %c0_i32_1 = arith.constant 0 : i32
    return %c0_i32, %c0_i32_0 : i32, i32
  }
  func.func @transform_4(%arg0: i32) -> (i32, i32) {
    %c0_i32 = arith.constant 0 : i32
    %c0_i32_0 = arith.constant 0 : i32
    %c0_i32_1 = arith.constant 0 : i32
    return %c0_i32, %c0_i32_0 : i32, i32
  }
  func.func @transform_5(%arg0: i32) -> (i32, i32) {
    %c0_i32 = arith.constant 0 : i32
    %c0_i32_0 = arith.constant 0 : i32
    %c0_i32_1 = arith.constant 0 : i32
    return %c0_i32, %c0_i32_0 : i32, i32
  }
  func.func @transform_6(%arg0: i32) -> (i32, i32) {
    %c0_i32 = arith.constant 0 : i32
    %c0_i32_0 = arith.constant 0 : i32
    %c0_i32_1 = arith.constant 0 : i32
    return %c0_i32, %c0_i32_0 : i32, i32
  }
  func.func @transform_7(%arg0: i32) -> (i32, i32) {
    %c0_i32 = arith.constant 0 : i32
    %c0_i32_0 = arith.constant 0 : i32
    return %arg0, %c0_i32 : i32, i32
  }
}

</mosaic_0001>

<bundles_post_ra>
// kernel: tpu_custom_call.1
= control target key start
LH: loop header
LB: loop body
LE: loop exit
PB: predicated region body
PF: predicated region fallthrough
CT: control target
= control target key end

     0   :  { %12 = vsyncpa [#allocation3], 0  ;;  %s1131_s0 = inlined_call_operand.vmem [shape: f32[64,16], index: 0, kind: input, shape index: {}]   ;;  %s1132_s1 = inlined_call_operand.vmem [shape: s32[64,1], index: 1, kind: input, shape index: {}]   ;;  %s1133_s2 = inlined_call_operand.vmem [shape: bf16[16,128], index: 2, kind: input, shape index: {}]   ;;  %s1134_s3 = inlined_call_operand.vmem [shape: f32[3,128], index: 3, kind: input, shape index: {}]   ;;  %s1135_s4 = inlined_call_operand.vmem [shape: f32[1,128], index: 4, kind: input, shape index: {}]   ;;  %s1136_s5 = inlined_call_operand.vmem [shape: bf16[128,128], index: 5, kind: input, shape index: {}]   ;;  %s1137_s6 = inlined_call_operand.vmem [shape: f32[1,128], index: 6, kind: input, shape index: {}]   ;;  %s1138_s7 = inlined_call_operand.hbm [shape: bf16[64,128], index: 7, kind: output, shape index: {}]  }
   0x1   :  { %14 = vsyncpa [#allocation3 + $0x1], 0  ;;  %s973_s24 = smov 0   ;;  %s975_s25 = smov 0  }
   0x2   :  { %s977_s26 = smov 0   ;;  %s979_s27 = smov 0  }
   0x3 LB: > { %s994_s28 = sadd.s32 4294967295, %s925_s27   ;;  %s714_s29 = sadd.s32 4294967294, %s925_s27   ;;  %s925_s27 = sphi %s979_s27, %s1144_s27   ;;  %s921_s26 = sphi %s977_s26, %s1143_s26   ;;  %s917_s25 = sphi %s975_s25, %s1142_s25   ;;  %s913_s24 = sphi %s973_s24, %s1141_s24  }
   0x4   : > { %s998_s30 = sadd.s32 1, %s925_s27   ;;  %s184_s8 = sadd.s32 1, %s921_s26 }
   0x5   : > { %s181_s9 = ssub.s32 %s925_s27, %s998_s30  ;;  %p194_p0 = scmp.ne.s32.totalorder %s921_s26, %s917_s25 }
   0x6   : > { %p182_p1 = scmp.eq.s32.totalorder %s181_s9, 0  ;;  %p195_p2 = scmp.eq.s32.totalorder %s994_s28, 3 }
   0x7   : > { %p200_p3 = scmp.ne.s32.totalorder %s917_s25, %s913_s24  ;;  %p201_p4 = scmp.eq.s32.totalorder %s714_s29, 3 }
   0x8   : > { %s1009_s10 = scalar_select %p182_p1, %s921_s26, %s184_s8  }
   0x9   : > { %p1011_p5 = por %p195_p2, %p194_p0  ;;  %p1015_p6 = por %p201_p4, %p200_p3 }
   0xa   : > { %p717_p7 = scmp.ge.s32.totalorder %s925_s27, 1  ;;  %p252_p8 = scmp.lt.s32.totalorder %s925_s27, 5 }
   0xc   : > { %p253_p9 = pnand %p717_p7, %p252_p8 }
   0xd   : > { %v838_v0 = vld [vmem:[%s1133_s2] sm:$0xff] (!%p253_p9)   ;;  %v927_v1 = vmov (!%p253_p9), 0.0   ;;  %s719_s15 = sshll.u32 (!%p253_p9), %s994_s28, 1  ;;  %vm928_vm0 = vmmov (!%p253_p9), 0   ;;  %v929_v2 = vmov (!%p253_p9), 0   ;;  %vm321_vm1 = vcmask (!%p253_p9), 130048  }
   0xe   : > { %256 = sbr.rel (%p253_p9) target bundleno = 850 (0x352), region = 48  ;;  %766 = vmatprep.subr.bf16.mxu0 (!%p253_p9), %v927_v1  ;;  %772 = vmatprep.subr.bf16.mxu1 (!%p253_p9), %v927_v1  ;;  %p290_p10 = scmp.lt.s32.totalorder (!%p253_p9), %s719_s15, 7  ;;  %v723_v18 = vld [vmem:[%s1135_s4] ss:$0 sm:$0xff] (!%p253_p9)  ;;  %v727_v20 = vld [vmem:[%s1134_s3 + $0x1] ss:$0 sm:$0xff] (!%p253_p9) }
   0xf   : > { %767 = vmatpush3.bf16.msra.mxu0 (!%p253_p9), %v838_v0  ;;  %768 = vmatprep.mubr.msk.bf16.mxu0 (!%p253_p9), %vm928_vm0, %v927_v1  ;;  %v726_v19 = vld [vmem:[%s1134_s3] ss:$0 sm:$0xff] (!%p253_p9)  ;;  %v728_v29 = vld [vmem:[%s1134_s3 + $0x2] ss:$0 sm:$0xff] (!%p253_p9)  ;;  %v840_v45 = vld [vmem:[%s1136_s5 + $0x8] sm:$0xff] (!%p253_p9)   ;;  %s286_s21 = sand.u32 (!%p253_p9), 1, %s917_s25  }
  0x10   : > { %836 = vset.pattern.permute.xlu0 (!%p253_p9), %v929_v2  ;;  %837 = vset.pattern.permute.xlu1 (!%p253_p9), %v929_v2  ;;  %v839_v44 = vld [vmem:[%s1136_s5] sm:$0xff] (!%p253_p9)   ;;  %v841_v46 = vld [vmem:[%s1136_s5 + $0x10] sm:$0xff] (!%p253_p9)   ;;  %v842_v47 = vld [vmem:[%s1136_s5 + $0x18] sm:$0xff] (!%p253_p9)   ;;  %s749_s23 = sshll.u32 (!%p253_p9), %s994_s28, 7  ;;  %s930_s28 = smov (!%p253_p9), [#allocation2]  }
  0x11   : > { %788 = vmatprep.mubr.msk.bf16.mxu1 (!%p253_p9), %vm928_vm0, %v927_v1  ;;  %773 = vmatpush3.bf16.msra.mxu1 (!%p253_p9), %v839_v44  ;;  %v843_v48 = vld [vmem:[%s1136_s5 + $0x20] sm:$0xff] (!%p253_p9)   ;;  %v844_v49 = vld [vmem:[%s1136_s5 + $0x28] sm:$0xff] (!%p253_p9)   ;;  %v845_v50 = vld [vmem:[%s1136_s5 + $0x30] sm:$0xff] (!%p253_p9)   ;;  %s1086_s14 = scalar_lea.hbm (!%p253_p9), %s1138_s7, %s749_s23  ;;  %s867_s17 = sshll.u32 (!%p253_p9), %s930_s28, 4  ;;  %s868_s17 = int_to_ptr.vmem [resolvable:$false] %s867_s17 }
  0x12   : > { %774 = vmatprep.subr.bf16.mxu1 (!%p253_p9), %v927_v1  ;;  %v846_v51 = vld [vmem:[%s1136_s5 + $0x38] sm:$0xff] (!%p253_p9)   ;;  %s869_s18 = scalar_lea.vmem (!%p253_p9), %s868_s17, 256 }
  0x15   : > { %s1146_s15 = smov (!%p290_p10, %s719_s15), 7  ;;  %775 = vmatpush3.bf16.msra.mxu1 %v840_v45 }
  0x16   : > { %s720_s16 = sshll.u32 %s1146_s15, 3  ;;  %776 = vmatprep.subr.bf16.mxu1 %v927_v1  ;;  %s1090_s15 = scalar_lea.sflag [#allocation3], %s286_s21 }
  0x17   : > { %s293_s19 = scalar_lea.vmem %s1131_s0, %s720_s16  ;;  %s299_s22 = scalar_lea.vmem %s1132_s1, %s720_s16 }
  0x18   : > { %v303_v3 = vld [vmem:[%s293_s19] sm:$0xff]  ;;  %v304_v4 = vld [vmem:[%s293_s19 + $0x8] sm:$0xff] }
  0x19   : > { %v366_v5 = vld [vmem:[%s299_s22] sm:$0xff]  ;;  %v305_v6 = vpack.c.bf16 %v304_v4, %v303_v3  ;;  %v367_v7 = vld [vmem:[%s299_s22 + $0x8] sm:$0xff]  ;;  %777 = vmatpush3.bf16.msra.mxu1 %v841_v46  ;;  %s718_s22 = sshll.u32 %s286_s21, 3 }
  0x1a   : > { %vm369_vm2 = vcmp.eq.s32.totalorder %v366_v5, 0  ;;  %vm390_vm3 = vcmp.eq.s32.totalorder %v366_v5, 1  ;;  %vm370_vm4 = vcmp.eq.s32.totalorder %v367_v7, 0  ;;  %vm391_vm5 = vcmp.eq.s32.totalorder %v367_v7, 1  ;;  %778 = vmatprep.subr.bf16.mxu1 %v927_v1  ;;  %s288_s29 = scalar_lea.vmem [#allocation2], %s718_s22 }
  0x1b   : > { %v371_v8 = vsel %vm369_vm2, 1, %v929_v2  ;;  %v392_v9 = vsel %vm390_vm3, 1, %v929_v2  ;;  %769 = vmatmul.mubr.msk.bf16.vlgmr.msra.gmra.mrb[0].mxu0 %vm321_vm1, %v305_v6  ;;  %v372_v10 = vsel %vm370_vm4, 1, %v929_v2  ;;  %vm411_vm6 = vcmp.eq.s32.totalorder %v366_v5, 2  ;;  %s640_s8 = sshll.u32 %s288_s29, 4  ;;  %s1088_s8 = int_to_ptr.vmem [resolvable:$true] %s640_s8 }
  0x1c   : > { %374 = vperm.xlu0 %836, %v371_v8   ;;  %395 = vperm.xlu1 %837, %v392_v9   ;;  %v393_v11 = vsel %vm391_vm5, 1, %v929_v2  ;;  %vm412_vm7 = vcmp.eq.s32.totalorder %v367_v7, 2  ;;  %v413_v12 = vsel %vm411_vm6, 1, %v929_v2  ;;  %s863_s16 = scalar_lea.vmem %s1088_s8, 128  ;;  %p870_p0 = scmp.lt.s32.totalorder %s1088_s8, %s868_s17 }
  0x1d   : > { %v414_v13 = vsel %vm412_vm7, 1, %v929_v2  ;;  %779 = vmatpush3.bf16.msra.mxu1 %v842_v47  ;;  %p864_p11 = scmp.ne.s32.totalorder %s1088_s8, %s863_s16  ;;  %p871_p1 = scmp.lt.s32.totalorder %s869_s18, %s863_s16 }
  0x1e   : > { %780 = vmatprep.subr.bf16.mxu1 %v927_v1 }
  0x1f   : > { %p865_p12 = pnand %p864_p11, %p1011_p5  ;;  %p872_p2 = por %p871_p1, %p870_p0 }
  0x20   : > { %377 = vperm.xlu0 %836, %v372_v10   ;;  %398 = vperm.xlu1 %837, %v393_v11  }
  0x21   : > { %781 = vmatpush3.bf16.msra.mxu1 %v843_v48  ;;  %p866_p13 = pneg %p865_p12 }
  0x22   : > { %782 = vmatprep.subr.bf16.mxu1 %v927_v1 }
  0x23   : > { %p873_p3 = pnand %p872_p2, %p866_p13 }
  0x24   : > { %416 = vperm.xlu0 %836, %v413_v12   ;;  %419 = vperm.xlu1 %837, %v414_v13   ;;  %v729_v13 = vld [vmem:[%s1137_s6] ss:$0 sm:$0xff] }
  0x25   : > { %783 = vmatpush3.bf16.msra.mxu1 %v844_v49 }
  0x26   : > { %784 = vmatprep.subr.bf16.mxu1 %v927_v1 }
  0x29   : > { %785 = vmatpush3.bf16.msra.mxu1 %v845_v50 }
  0x2a   : > { %786 = vmatprep.subr.bf16.mxu1 %v927_v1 }
  0x2d   : > { %787 = vmatpush3.bf16.msra.mxu1 %v846_v51 }
  0x9b   : > { %v375_v14 = vpop.permute.xlu0 %374  ;;  %v396_v15 = vpop.permute.xlu1 %395 }
  0x9c   : > { %vm379_vm8 = vcmp.eq.s32.totalorder %v375_v14, 1  ;;  %vm400_vm9 = vcmp.eq.s32.totalorder %v396_v15, 1 }
  0x9d   : > { %v385_v25 = vsel %vm379_vm8, %v726_v19, 0.0  ;;  %v406_v26 = vsel %vm400_vm9, %v727_v20, 0.0 }
  0x9f   : > { %v378_v16 = vpop.permute.xlu0 %377  ;;  %v399_v17 = vpop.permute.xlu1 %398 }
  0xa0   : > { %vm380_vm10 = vcmp.eq.s32.totalorder %v378_v16, 1  ;;  %vm401_vm12 = vcmp.eq.s32.totalorder %v399_v17, 1 }
  0xa1   : > { %v386_v33 = vsel %vm380_vm10, %v726_v19, 0.0  ;;  %v407_v37 = vsel %vm401_vm12, %v727_v20, 0.0 }
  0xa3   : > { %v417_v21 = vpop.permute.xlu0 %416  ;;  %v420_v27 = vpop.permute.xlu1 %419 }
  0xa4   : > { %vm421_vm11 = vcmp.eq.s32.totalorder %v417_v21, 1  ;;  %vm422_vm13 = vcmp.eq.s32.totalorder %v420_v27, 1 }
  0xa5   : > { %v427_v36 = vsel %vm421_vm11, %v728_v29, 0.0  ;;  %v428_v40 = vsel %vm422_vm13, %v728_v29, 0.0 }
  0xee   : > { %v359_v22 = vpop.f32.mrb[0].mxu0 }
  0xef   : > { %v360_v23 = vadd.f32 %v723_v18, %v359_v22  ;;  %v770_v24 = vpop.f32.mrb[1].mxu0 }
  0xf0   : > { %v362_v28 = vpop.f32.mrb[2].mxu0 }
  0xf1   : > { %v387_v30 = vadd.f32 %v385_v25, %v360_v23  ;;  %v363_v31 = vadd.f32 %v723_v18, %v362_v28  ;;  %v771_v32 = vpop.f32.mrb[3].mxu0 }
  0xf3   : > { %v408_v34 = vadd.f32 %v406_v26, %v387_v30  ;;  %v388_v35 = vadd.f32 %v386_v33, %v363_v31 }
  0xf5   : > { %v409_v38 = vadd.f32 %v407_v37, %v388_v35  ;;  %v429_v39 = vadd.f32 %v427_v36, %v408_v34 }
  0xf7   : > { %431 = vadd.xlane.f32.xlu0 %v429_v39  ;;  %v430_v41 = vadd.f32 %v428_v40, %v409_v38  ;;  %v435_v42 = vmul.f32 %v429_v39, %v429_v39 }
  0xf9   : > { %433 = vadd.xlane.f32.xlu1 %v430_v41  ;;  %v436_v43 = vmul.f32 %v430_v41, %v430_v41 }
  0xfb   : > { %437 = vadd.xlane.f32.xlu0 %v435_v42 }
  0xff   : > { %439 = vadd.xlane.f32.xlu0 %v436_v43 }
 0x184   : > { %v432_v52 = vpop.xlane.xlu0 %431 }
 0x185   : > { %v441_v53 = vmul.f32 0.0078125, %v432_v52 }
 0x186   : > { %v434_v54 = vpop.xlane.xlu1 %433 }
 0x187   : > { %v445_v56 = vmul.f32 %v441_v53, %v441_v53  ;;  %v442_v57 = vmul.f32 0.0078125, %v434_v54  ;;  %v451_v5 = vsub.f32 %v429_v39, %v441_v53 }
 0x188   : > { %v438_v55 = vpop.xlane.xlu0 %437 }
 0x189   : > { %v443_v58 = vmul.f32 0.0078125, %v438_v55  ;;  %v446_v61 = vmul.f32 %v442_v57, %v442_v57  ;;  %v452_v6 = vsub.f32 %v430_v41, %v442_v57 }
 0x18b   : > { %v447_v59 = vsub.f32 %v443_v58, %v445_v56 }
 0x18c   : > { %v440_v60 = vpop.xlane.xlu0 %439 }
 0x18d   : > { %v449_v62 = vmax.f32 %v447_v59, 0.0  ;;  %v444_v63 = vmul.f32 0.0078125, %v440_v60 }
 0x18f   : > { %v453_v0 = vadd.f32 1e-05, %v449_v62  ;;  %v448_v2 = vsub.f32 %v444_v63, %v446_v61 }
 0x191   : > { %847 = vrsqrt.f32 %v453_v0  ;;  %v450_v3 = vmax.f32 %v448_v2, 0.0 }
 0x193   : > { %v454_v4 = vadd.f32 1e-05, %v450_v3 }
 0x195   : > { %849 = vrsqrt.f32 %v454_v4 }
 0x19b   : > { %v848_v1 = vpop.eup %847 }
 0x19c   : > { %v457_v7 = vmul.f32 %v848_v1, %v451_v5 }
 0x19e   : > { %v459_v10 = vmax.f32 %v457_v7, 0.0 }
 0x19f   : > { %v850_v8 = vpop.eup %849 }
 0x1a0   : > { %v458_v9 = vmul.f32 %v850_v8, %v452_v6 }
 0x1a2   : > { %v460_v11 = vmax.f32 %v458_v9, 0.0 }
 0x1a4   : > { %v461_v12 = vpack.c.bf16 %v460_v11, %v459_v10 }
 0x1a6   : > { %789 = vmatmul.mubr.bf16.vlgmr.msra.gmra.mrb[0].mxu1 %v461_v12 }
 0x279   : > { %v567_v14 = vpop.f32.mrb[0].mxu1 }
 0x27a   : > { %v568_v15 = vadd.f32 %v729_v13, %v567_v14  ;;  %v790_v16 = vpop.f32.mrb[1].mxu1 }
 0x27b   : > { %v570_v17 = vpop.f32.mrb[2].mxu1 }
 0x27c   : > { %v571_v18 = vadd.f32 %v729_v13, %v570_v17  ;;  %574 = vadd.xlane.f32.xlu1 %v568_v15  ;;  %v791_v19 = vpop.f32.mrb[3].mxu1  ;;  %v578_v20 = vmul.f32 %v568_v15, %v568_v15 }
 0x27e   : > { %576 = vadd.xlane.f32.xlu0 %v571_v18  ;;  %v579_v21 = vmul.f32 %v571_v18, %v571_v18 }
 0x280   : > { %580 = vadd.xlane.f32.xlu1 %v578_v20 }
 0x282   : > { %582 = vadd.xlane.f32.xlu0 %v579_v21 }
 0x309   : > { %v575_v22 = vpop.xlane.xlu1 %574 }
 0x30a   : > { %v584_v23 = vmul.f32 0.041666668, %v575_v22 }
 0x30b   : > { %v577_v24 = vpop.xlane.xlu0 %576 }
 0x30c   : > { %v585_v25 = vmul.f32 0.041666668, %v577_v24  ;;  %v588_v27 = vmul.f32 %v584_v23, %v584_v23  ;;  %v594_v38 = vsub.f32 %v568_v15, %v584_v23 }
 0x30d   : > { %v581_v26 = vpop.xlane.xlu1 %580 }
 0x30e   : > { %v586_v28 = vmul.f32 0.041666668, %v581_v26  ;;  %v589_v30 = vmul.f32 %v585_v25, %v585_v25  ;;  %v595_v40 = vsub.f32 %v571_v18, %v585_v25 }
 0x30f   : > { %v583_v29 = vpop.xlane.xlu0 %582 }
 0x310   : > { %v590_v31 = vsub.f32 %v586_v28, %v588_v27  ;;  %v587_v32 = vmul.f32 0.041666668, %v583_v29 }
 0x312   : > { %v592_v33 = vmax.f32 %v590_v31, 0.0  ;;  %v591_v34 = vsub.f32 %v587_v32, %v589_v30 }
 0x314   : > { %v596_v35 = vadd.f32 1e-05, %v592_v33  ;;  %v593_v36 = vmax.f32 %v591_v34, 0.0 }
 0x316   : > { %851 = vrsqrt.f32 %v596_v35  ;;  %v597_v37 = vadd.f32 1e-05, %v593_v36 }
 0x318   : > { %853 = vrsqrt.f32 %v597_v37 }
 0x320   : > { %v852_v39 = vpop.eup %851 }
 0x321   : > { %v600_v41 = vmul.f32 %v852_v39, %v594_v38 }
 0x322   : > { %v854_v42 = vpop.eup %853 }
 0x323   : > { %v602_v43 = vmax.f32 %v600_v41, 0.0  ;;  %v601_v44 = vmul.f32 %v854_v42, %v595_v40 }
 0x325   : > { %v738_v45 = vmul.f32 -1.442695, %v602_v43  ;;  %v603_v46 = vmax.f32 %v601_v44, 0.0 }
 0x327   : > { %855 = vpow2.f32 %v738_v45  ;;  %v739_v47 = vmul.f32 -1.442695, %v603_v46 }
 0x329   : > { %857 = vpow2.f32 %v739_v47 }
 0x331   : > { %v856_v48 = vpop.eup %855 }
 0x332   : > { %v610_v49 = vadd.f32 1.0, %v856_v48 }
 0x333   : > { %v858_v50 = vpop.eup %857 }
 0x334   : > { %v611_v51 = vadd.f32 1.0, %v858_v50  ;;  %859 = vrcp.f32 %v610_v49 }
 0x336   : > { %861 = vrcp.f32 %v611_v51 }
 0x33e   : > { %v860_v52 = vpop.eup %859 }
 0x340   : > { %v862_v53 = vpop.eup %861 }
 0x341   : > { %v753_v54 = vpack.c.bf16 %v862_v53, %v860_v52 }
 0x343   : > { %754 = vst [vmem:[%s288_s29] sm:$0xff] %v753_v54  }
 0x344   : > { %876 = shalt.err (!%p873_p3)
}
 0x345   : > { %s877_s19 = scalar_lea.hbm %s1086_s14, 128  ;;  %s881_s22 = scalar_lea.hbm %s1138_s7, 512 }
 0x346   : > { %p878_p4 = scmp.ne.s32.totalorder %s1086_s14, %s877_s19  ;;  %p882_p9 = scmp.lt.u32.totalorder %s1086_s14, %s1138_s7 }
 0x347   : > { %p883_p10 = scmp.lt.u32.totalorder %s881_s22, %s877_s19  ;;  %p885_p12 = scmp.lt.u32.totalorder %s877_s19, %s1086_s14 }
 0x348   : > { %p879_p7 = pnand %p878_p4, %p1011_p5 }
 0x349   : > { %p884_p11 = por %p883_p10, %p882_p9 }
 0x34a   : > { %p880_p8 = pneg %p879_p7 }
 0x34b   : > { %p886_p13 = por %p885_p12, %p884_p11 }
 0x34d   : > { %p887_p0 = pnand %p886_p13, %p880_p8 }
 0x34f   : > { %890 = shalt.err (!%p887_p0)
}
 0x350   : > { %s931_s9 = smov 64   ;;  %s932_s13 = smov 4  }
 0x351   : > { %792 = dma.vmem_to_hbm [thread:$0]  (%p1011_p5), %s1088_s8, 128, %s1086_s14, %s1090_s15, %s931_s9, %s931_s9, %s932_s13  }
 0x352 PF: > { %p798_p1 = scmp.ge.s32.totalorder %s925_s27, 2  ;;  %s655_s16 = sand.u32 1, %s913_s24  }
 0x353   : > { %s656_s28 = scalar_lea.sflag [#allocation3], %s655_s16 }
 0x354   : > { %p795_p2 = pnand %p798_p1, %p1015_p6 }
 0x356   : > { %908 = dma.done.wait (!%p795_p2), %s656_s28, 128  }
 0x357   : > { %910 = vsyncadd (!%p795_p2), %s656_s28, 4294967168  ;;  %p17_p3 = scmp.ge.s32.totalorder %s998_s30, 6   ;;  %s1141_s24 = smov %s917_s25 }
 0x358   : > { %s1142_s25 = smov %s921_s26  ;;  %s1143_s26 = smov %s1009_s10 }
 0x359   : > { %s1144_s27 = smov %s998_s30  ;;  %19 = sbr.rel (!%p17_p3) target bundleno = 3 (0x3), region = 86 }
 0x360   :  { %661 = vsyncpa [#allocation3], 1 }
 0x361   :  { %663 = vsyncpa [#allocation3 + $0x1], 1 }

</bundles_post_ra>
